<compile_context>
chip_gen: v7x
topology: tpu7x:2x2x1
jax: 0.10.0
libtpu: 0.0.40
codegen_flags: <defaults>
</compile_context>

<pallas_src>
import math

import jax
import jax.numpy as jnp
from jax.experimental import pallas as pl
from jax.experimental.pallas import tpu as pltpu

SIGMA_MIN = 0.002
SIGMA_MAX = 80.0
RHO = 7.0
NUM_SCALES = 81
SIGMA_DATA = 0.5  # standard EDM / consistency-model preconditioning constant


# ----------------------------- sigma schedule (from the module) ---------------

def karras_sigmas(num_scales=NUM_SCALES, sigma_min=SIGMA_MIN,
                  sigma_max=SIGMA_MAX, rho=RHO):
    i = jnp.arange(num_scales, dtype=jnp.float32)
    s = sigma_max ** (1.0 / rho) + i / (num_scales - 1) * (
        sigma_min ** (1.0 / rho) - sigma_max ** (1.0 / rho))
    return s ** rho


def get_sigma(n):
    s = SIGMA_MAX ** (1.0 / RHO) + n / (NUM_SCALES - 1) * (
        SIGMA_MIN ** (1.0 / RHO) - SIGMA_MAX ** (1.0 / RHO))
    return s ** RHO


def find_nearest(t, sigmas):
    return jnp.argmin(jnp.abs(t[:, None] - sigmas[None, :]), axis=1)


# ----------------------------- small helpers ----------------------------------

def _round_up(x, m):
    return ((x + m - 1) // m) * m


def _largest_aligned_divisor(n_pad, align, target):
    """Largest multiple of `align` that divides n_pad and is <= target (>= align)."""
    m = n_pad // align
    best = 1
    for t in range(1, m + 1):
        if m % t == 0 and t * align <= target:
            best = t
    return best * align


def _device_kind():
    try:
        return jax.devices()[0].device_kind.lower()
    except Exception:
        return ""


def _is_v7x():
    return "7" in _device_kind()


def _vmem_cap_bytes():
    """Generation-aware VMEM ceiling (leave ~25% headroom for compiler scratch)."""
    try:
        cap = int(pltpu.get_tpu_info().vmem_capacity_bytes)
    except Exception:
        cap = (64 << 20) if _is_v7x() else (128 << 20)
    return (cap * 3) // 4


# ----------------------------- Pallas kernel ----------------------------------

def _finetune_kernel(x_ref, cin_ref, cnoise_ref, wf_ref, emb_ref,
                     wh_ref, bh_ref, out_ref, acc_ref):
    """Tiled fused feature-extraction + linear head.

    grid = (B_pad // TILE_B, D_pad // TILE_D)   axis 0 parallel, axis 1 arbitrary
    NOTE: the accumulator init below is correct only because the reduction
    axis (grid axis 1) is the LAST grid axis and marked "arbitrary".

    x_ref      : (TILE_B, TILE_D) f32/bf16  flattened image tile
    cin_ref    : (TILE_B, 1)      f32       c_in(sigma)    = 1/sqrt(sigma^2 + sigma_data^2)
    cnoise_ref : (TILE_B, 1)      f32       c_noise(sigma) = 0.25*log(sigma)
    wf_ref     : (TILE_D, E_pad)  bf16      synthetic base_model projection tile
    emb_ref    : (1, E_pad)       f32       sigma-embedding direction
    wh_ref     : (E_pad, K_pad)   bf16      linear_head weight (transposed torch layout)
    bh_ref     : (1, K_pad)       f32       linear_head bias
    out_ref    : (TILE_B, K_pad)  f32       logits
    acc_ref    : (TILE_B, E_pad)  f32       VMEM accumulator for x @ W_feat
    """
    k = pl.program_id(1)

    @pl.when(k == 0)
    def _init():
        acc_ref[...] = jnp.zeros_like(acc_ref)

    # MXU: bf16 operands, f32 accumulation (cast x in-kernel; VPU op, hidden
    # under the DMA of the next tile).
    acc_ref[...] += jnp.dot(x_ref[...].astype(jnp.bfloat16), wf_ref[...],
                            preferred_element_type=jnp.float32)

    @pl.when(k == pl.num_programs(1) - 1)
    def _epilogue():
        # f32 epilogue (v5e has no bf16 VPU/EUP path).
        z = cin_ref[...] * acc_ref[...] + cnoise_ref[...] * emb_ref[...]
        h = jnp.tanh(z)                                             # EUP
        out_ref[...] = (jnp.dot(h.astype(jnp.bfloat16), wh_ref[...],
                                preferred_element_type=jnp.float32)
                        + bh_ref[...])                              # MXU + bias


# ----------------------------- parameter preparation (once per model) ----------

def prepare_params(params):
    """Pad + bf16-cast the weights ONCE, outside the per-call forward path."""
    w_feat, emb = params["w_feat"], params["emb"]
    w_head, b_head = params["w_head"], params["b_head"]
    D, E = w_feat.shape
    K = w_head.shape[1]
    D_pad, E_pad, K_pad = _round_up(D, 128), _round_up(E, 128), _round_up(K, 128)

    wfb = jnp.zeros((D_pad, E_pad), jnp.bfloat16).at[:D, :E].set(
        w_feat.astype(jnp.bfloat16))
    embp = jnp.zeros((1, E_pad), jnp.float32).at[:, :E].set(emb.astype(jnp.float32))
    whb = jnp.zeros((E_pad, K_pad), jnp.bfloat16).at[:E, :K].set(
        w_head.astype(jnp.bfloat16))
    bhp = jnp.zeros((1, K_pad), jnp.float32).at[:, :K].set(b_head.astype(jnp.float32))

    return dict(w_feat=wfb, emb=embp, w_head=whb, b_head=bhp,
                d=D, e=E, k=K, d_pad=D_pad, e_pad=E_pad, k_pad=K_pad)


# ----------------------------- wrapper -----------------------------------------

def finetune_forward(x, prep, noise_aug=0.0, noise=None,
                     *, tile_b_target=512, tile_d_target=4096):
    """Mirrors FinetuneModel.forward (task='linear'). `prep` = prepare_params(...)."""
    B = x.shape[0]
    D, E, K = prep["d"], prep["e"], prep["k"]
    D_pad, E_pad, K_pad = prep["d_pad"], prep["e_pad"], prep["k_pad"]
    wfb, embp, whb, bhp = prep["w_feat"], prep["emb"], prep["w_head"], prep["b_head"]

    sigmas = karras_sigmas()
    if noise_aug != 0.0:
        if noise is None:
            # PyTorch uses torch.randn_like(x); deterministic Gaussian here.
            noise = jax.random.normal(jax.random.PRNGKey(0), x.shape, jnp.float32)
        idx = find_nearest(jnp.full((B,), noise_aug, dtype=jnp.float32), sigmas)
        idx = idx.astype(jnp.float32)
    else:
        idx = jnp.full((B,), NUM_SCALES - 1, dtype=jnp.float32)

    t = get_sigma(idx)                                                    # (B,)
    c_in = (1.0 / jnp.sqrt(t ** 2 + SIGMA_DATA ** 2)).astype(jnp.float32)[:, None]
    c_noise = (0.25 * jnp.log(t)).astype(jnp.float32)[:, None]

    x_flat = x.reshape(B, -1)                                             # no copy
    assert x_flat.shape[1] == D, (x_flat.shape, D)

    # ---- tiling: pad B only to mult-of-8, D only to mult-of-128; tiles divide
    #      the padded extents (no dead DMA / FLOPs from over-padding). ----------
    is_v7x = _is_v7x()
    B_pad = _round_up(B, 8)
    if B_pad <= tile_b_target:
        TILE_B = B_pad
    else:
        TILE_B = _largest_aligned_divisor(B_pad, 8, tile_b_target)

    # v7x has 2 TensorCores: make sure the "parallel" batch axis spans both.
    if is_v7x:
        nb = B_pad // TILE_B
        if nb == 1 and B_pad >= 16:
            if B_pad % 16 != 0:
                B_pad = _round_up(B, 16)
            TILE_B = B_pad // 2
        elif nb > 1 and nb % 2 == 1 and TILE_B % 16 == 0:
            TILE_B //= 2

    if D_pad <= tile_d_target:
        TILE_D = D_pad
    else:
        TILE_D = _largest_aligned_divisor(D_pad, 128, tile_d_target)

    grid = (B_pad // TILE_B, D_pad // TILE_D)

    # ---- x operand: avoid the wrapper pad+cast pass when shapes are already
    #      aligned and there is no noise augmentation; otherwise fuse the noise
    #      add, zero-pad and bf16 cast into a single pass. -----------------------
    need_copy = (noise_aug != 0.0) or (B_pad != B) or (D_pad != D)
    if need_copy:
        x_src = x_flat if noise_aug == 0.0 else (
            x_flat + noise.reshape(B, -1) * noise_aug)
        xb = jnp.zeros((B_pad, D_pad), jnp.bfloat16).at[:B, :D].set(
            x_src.astype(jnp.bfloat16))
    else:
        xb = x_flat                         # kernel casts to bf16 before the dot

    # Padded c_in rows use ones (benign: those rows give tanh(0)@W + b = b_head
    # and are sliced off); c_noise padded rows are zero.
    if B_pad == B:
        cinp, cnsp = c_in, c_noise
    else:
        cinp = jnp.ones((B_pad, 1), jnp.float32).at[:B].set(c_in)
        cnsp = jnp.zeros((B_pad, 1), jnp.float32).at[:B].set(c_noise)

    # ---- generation-aware VMEM budget ------------------------------------------
    x_bytes = jnp.dtype(xb.dtype).itemsize
    vmem_needed = (2 * TILE_B * TILE_D * x_bytes      # x tile (double-buffered)
                   + 2 * TILE_D * E_pad * 2           # w_feat tile (double-buffered bf16)
                   + 2 * E_pad * K_pad * 2            # w_head (worst case double-buffered)
                   + 2 * (E_pad + K_pad) * 4          # emb + b_head
                   + 4 * TILE_B * 4                   # c_in + c_noise
                   + 2 * TILE_B * K_pad * 4           # output tile (f32)
                   + TILE_B * E_pad * 4)              # accumulator (f32)
    cap = _vmem_cap_bytes()                            # ~96 MiB v5e/v6e, ~48 MiB v7x
    vmem_limit = int(min(max(int(vmem_needed * 1.5), 32 << 20), cap))
    vmem_limit = max(vmem_limit, int(vmem_needed * 1.25))  # never under-provision

    cost = pl.CostEstimate(
        flops=2 * B_pad * D_pad * E_pad + 2 * B_pad * E_pad * K_pad,
        transcendentals=B_pad * E_pad,
        bytes_accessed=int(B_pad * D_pad * x_bytes
                           + wfb.size * 2 * grid[0]     # w_feat re-streamed per batch tile
                           + whb.size * 2
                           + embp.size * 4 + bhp.size * 4
                           + (B_pad * 2) * 4
                           + B_pad * K_pad * 4),
    )

    def _run(single_buffer_invariants):
        # grid-invariant operands: a second buffer buys nothing, so single-buffer
        # them (matters most under v7x's 64 MiB VMEM).
        inv_kw = (dict(pipeline_mode=pl.Buffered(1))
                  if single_buffer_invariants else {})
        in_specs = [
            pl.BlockSpec((TILE_B, TILE_D), lambda i, k: (i, k)),          # x
            pl.BlockSpec((TILE_B, 1), lambda i, k: (i, 0), **inv_kw),     # c_in
            pl.BlockSpec((TILE_B, 1), lambda i, k: (i, 0), **inv_kw),     # c_noise
            pl.BlockSpec((TILE_D, E_pad), lambda i, k: (k, 0)),           # w_feat
            pl.BlockSpec((1, E_pad), lambda i, k: (0, 0), **inv_kw),      # emb
            pl.BlockSpec((E_pad, K_pad), lambda i, k: (0, 0), **inv_kw),  # w_head
            pl.BlockSpec((1, K_pad), lambda i, k: (0, 0), **inv_kw),      # b_head
        ]
        out_spec = pl.BlockSpec((TILE_B, K_pad), lambda i, k: (i, 0))
        out = pl.pallas_call(
            _finetune_kernel,
            out_shape=jax.ShapeDtypeStruct((B_pad, K_pad), jnp.float32),
            grid_spec=pltpu.PrefetchScalarGridSpec(
                num_scalar_prefetch=0,
                grid=grid,
                in_specs=in_specs,
                out_specs=out_spec,
                scratch_shapes=[pltpu.VMEM((TILE_B, E_pad), jnp.float32)],
            ),
            compiler_params=pltpu.CompilerParams(
                dimension_semantics=("parallel", "arbitrary"),
                vmem_limit_bytes=vmem_limit,
            ),
            cost_estimate=cost,
        )(xb, cinp, cnsp, wfb, embp, whb, bhp)
        return jax.block_until_ready(out)

    try:
        out_pad = _run(True)
    except Exception:
        # Fallback if this Pallas build rejects pipeline_mode=pl.Buffered(1).
        out_pad = _run(False)

    return out_pad[:B, :K]


# ----------------------------- reference (pure JAX) -----------------------------

def finetune_reference(x, params, noise_aug=0.0, noise=None):
    B = x.shape[0]
    sigmas = karras_sigmas()
    if noise_aug != 0.0:
        if noise is None:
            noise = jax.random.normal(jax.random.PRNGKey(0), x.shape, jnp.float32)
        idx = find_nearest(jnp.full((B,), noise_aug, jnp.float32), sigmas).astype(jnp.float32)
        x = x + noise * noise_aug
    else:
        idx = jnp.full((B,), NUM_SCALES - 1, dtype=jnp.float32)
    t = get_sigma(idx)
    c_in = (1.0 / jnp.sqrt(t ** 2 + SIGMA_DATA ** 2))[:, None]
    c_noise = (0.25 * jnp.log(t))[:, None]
    x_flat = x.reshape(B, -1).astype(jnp.float32)
    h = jnp.tanh(c_in * (x_flat @ params["w_feat"]) + c_noise * params["emb"])
    return h @ params["w_head"] + params["b_head"]


# ----------------------------- params -------------------------------------------

def init_params(key, d_in, embed_dim, class_num):
    k1, k2, k3 = jax.random.split(key, 3)
    # synthetic base_model parameters
    w_feat = jax.random.normal(k1, (d_in, embed_dim), jnp.float32) / math.sqrt(d_in)
    emb = jax.random.normal(k2, (1, embed_dim), jnp.float32)
    # linear_head: weight zeroed then trunc_normal_(std=2e-5), bias zeroed
    w_head = 2e-5 * jax.random.truncated_normal(
        k3, -2.0, 2.0, (embed_dim, class_num), jnp.float32)
    b_head = jnp.zeros((1, class_num), jnp.float32)
    return dict(w_feat=w_feat, emb=emb, w_head=w_head, b_head=b_head)


if __name__ == "__main__":
    key = jax.random.PRNGKey(0)
    kx, kp = jax.random.split(key)

    B, C, H, W = 2, 4, 16, 16          # small NCHW input
    embed_dim, class_num = 32, 10

    x = jax.random.normal(kx, (B, C, H, W), jnp.float32)
    params = init_params(kp, C * H * W, embed_dim, class_num)
    prep = prepare_params(params)      # pad + bf16-cast weights once

    out = finetune_forward(x, prep, noise_aug=0.0)    # default path: idx = num_scales-1
    out = jax.block_until_ready(out)
    assert out.shape == (B, class_num), out.shape
    assert bool(jnp.all(jnp.isfinite(out)))

    # tolerance vs. f32 reference (bf16 MXU operands, f32 accumulation)
    ref = finetune_reference(x, params, noise_aug=0.0)
    assert bool(jnp.allclose(out, ref, rtol=2e-2, atol=1e-5)), (
        float(jnp.max(jnp.abs(out - ref))))

    print("KERNEL_OK")
</pallas_src>

<mosaic_0001>
module attributes {stable_mosaic.version = 11 : i64} {
  func.func @_finetune_kernel(%arg0: i32, %arg1: i32, %arg2: memref<8x1024xbf16, #tpu.memory_space<vmem>>, %arg3: memref<8x1xf32, #tpu.memory_space<vmem>>, %arg4: memref<8x1xf32, #tpu.memory_space<vmem>>, %arg5: memref<1024x128xbf16, #tpu.memory_space<vmem>>, %arg6: memref<1x128xf32, #tpu.memory_space<vmem>>, %arg7: memref<128x128xbf16, #tpu.memory_space<vmem>>, %arg8: memref<1x128xf32, #tpu.memory_space<vmem>>, %arg9: memref<8x128xf32, #tpu.memory_space<vmem>>, %arg10: memref<8x128xf32, #tpu.memory_space<vmem>>) attributes {dimension_semantics = [#tpu.dimension_semantics<parallel>, #tpu.dimension_semantics<arbitrary>], iteration_bounds = array<i64: 1, 1>, scalar_prefetch = 0 : i64, scratch_operands = 1 : i64, tpu.core_type = #tpu.core_type<tc>, window_params = [{transform_indices = @transform_0, window_bounds = array<i64: 8, 1024>}, {pipeline_mode = #tpu.pipeline_mode<synchronous>, transform_indices = @transform_1, window_bounds = array<i64: 8, 1>}, {pipeline_mode = #tpu.pipeline_mode<synchronous>, transform_indices = @transform_2, window_bounds = array<i64: 8, 1>}, {transform_indices = @transform_3, window_bounds = array<i64: 1024, 128>}, {pipeline_mode = #tpu.pipeline_mode<synchronous>, transform_indices = @transform_4, window_bounds = array<i64: 1, 128>}, {pipeline_mode = #tpu.pipeline_mode<synchronous>, transform_indices = @transform_5, window_bounds = array<i64: 128, 128>}, {pipeline_mode = #tpu.pipeline_mode<synchronous>, transform_indices = @transform_6, window_bounds = array<i64: 1, 128>}, {transform_indices = @transform_7, window_bounds = array<i64: 8, 128>}]} {
    %c0_i32 = arith.constant 0 : i32
    %0 = arith.cmpi eq, %arg1, %c0_i32 : i32
    %1 = arith.extui %0 : i1 to i32
    %c0_i32_0 = arith.constant 0 : i32
    %2 = arith.cmpi ne, %1, %c0_i32_0 : i32
    scf.if %2 {
      %cst_10 = arith.constant 0.000000e+00 : f32
      %12 = vector.broadcast %cst_10 : f32 to vector<8x128xf32>
      %c0_11 = arith.constant 0 : index
      %c0_12 = arith.constant 0 : index
      %13 = vector.load %arg10[%c0_11, %c0_12] : memref<8x128xf32, #tpu.memory_space<vmem>>, vector<8x128xf32>
      tpu.vector_store %arg10[%c0_11, %c0_12], %12 {strides = array<i32>} : memref<8x128xf32, #tpu.memory_space<vmem>>, vector<8x128xf32>,
    } else {
    }
    %c0 = arith.constant 0 : index
    %c0_1 = arith.constant 0 : index
    %3 = vector.load %arg10[%c0, %c0_1] : memref<8x128xf32, #tpu.memory_space<vmem>>, vector<8x128xf32>
    %c0_2 = arith.constant 0 : index
    %c0_3 = arith.constant 0 : index
    %4 = vector.load %arg2[%c0_2, %c0_3] : memref<8x1024xbf16, #tpu.memory_space<vmem>>, vector<8x1024xbf16>
    %c0_4 = arith.constant 0 : index
    %c0_5 = arith.constant 0 : index
    %5 = vector.load %arg5[%c0_4, %c0_5] : memref<1024x128xbf16, #tpu.memory_space<vmem>>, vector<1024x128xbf16>
    %cst = arith.constant dense<0.000000e+00> : vector<8x128xf32>
    %6 = tpu.matmul %4, %5, %cst {dimension_numbers = #tpu.dot_dimension_numbers<[1], [0], [0], [1], [0, 0, 1, 1], [], []>} : vector<8x1024xbf16>, vector<1024x128xbf16>, vector<8x128xf32> -> vector<8x128xf32>
    %7 = arith.addf %3, %6 : vector<8x128xf32>
    %c0_6 = arith.constant 0 : index
    %c0_7 = arith.constant 0 : index
    %8 = vector.load %arg10[%c0_6, %c0_7] : memref<8x128xf32, #tpu.memory_space<vmem>>, vector<8x128xf32>
    tpu.vector_store %arg10[%c0_6, %c0_7], %7 {strides = array<i32>} : memref<8x128xf32, #tpu.memory_space<vmem>>, vector<8x128xf32>,
    %c0_i32_8 = arith.constant 0 : i32
    %9 = arith.cmpi eq, %arg1, %c0_i32_8 : i32
    %10 = arith.extui %9 : i1 to i32
    %c0_i32_9 = arith.constant 0 : i32
    %11 = arith.cmpi ne, %10, %c0_i32_9 : i32
    scf.if %11 {
      %c0_10 = arith.constant 0 : index
      %c0_11 = arith.constant 0 : index
      %12 = vector.load %arg3[%c0_10, %c0_11] : memref<8x1xf32, #tpu.memory_space<vmem>>, vector<8x1xf32>
      %c0_12 = arith.constant 0 : index
      %c0_13 = arith.constant 0 : index
      %13 = vector.load %arg10[%c0_12, %c0_13] : memref<8x128xf32, #tpu.memory_space<vmem>>, vector<8x128xf32>
      %14 = vector.broadcast %12 : vector<8x1xf32> to vector<8x128xf32>
      %15 = arith.mulf %14, %13 : vector<8x128xf32>
      %c0_14 = arith.constant 0 : index
      %c0_15 = arith.constant 0 : index
      %16 = vector.load %arg4[%c0_14, %c0_15] : memref<8x1xf32, #tpu.memory_space<vmem>>, vector<8x1xf32>
      %c0_16 = arith.constant 0 : index
      %c0_17 = arith.constant 0 : index
      %17 = vector.load %arg6[%c0_16, %c0_17] : memref<1x128xf32, #tpu.memory_space<vmem>>, vector<1x128xf32>
      %18 = vector.broadcast %16 : vector<8x1xf32> to vector<8x128xf32>
      %19 = vector.broadcast %17 : vector<1x128xf32> to vector<8x128xf32>
      %20 = arith.mulf %18, %19 : vector<8x128xf32>
      %21 = arith.addf %15, %20 : vector<8x128xf32>
      %22 = math.tanh %21 : vector<8x128xf32>
      %23 = arith.truncf %22 : vector<8x128xf32> to vector<8x128xbf16>
      %c0_18 = arith.constant 0 : index
      %c0_19 = arith.constant 0 : index
      %24 = vector.load %arg7[%c0_18, %c0_19] : memref<128x128xbf16, #tpu.memory_space<vmem>>, vector<128x128xbf16>
      %cst_20 = arith.constant dense<0.000000e+00> : vector<8x128xf32>
      %25 = tpu.matmul %23, %24, %cst_20 {dimension_numbers = #tpu.dot_dimension_numbers<[1], [0], [0], [1], [0, 0, 1, 1], [], []>} : vector<8x128xbf16>, vector<128x128xbf16>, vector<8x128xf32> -> vector<8x128xf32>
      %c0_21 = arith.constant 0 : index
      %c0_22 = arith.constant 0 : index
      %26 = vector.load %arg8[%c0_21, %c0_22] : memref<1x128xf32, #tpu.memory_space<vmem>>, vector<1x128xf32>
      %27 = vector.broadcast %26 : vector<1x128xf32> to vector<8x128xf32>
      %28 = arith.addf %25, %27 : vector<8x128xf32>
      %c0_23 = arith.constant 0 : index
      %c0_24 = arith.constant 0 : index
      %29 = vector.load %arg9[%c0_23, %c0_24] : memref<8x128xf32, #tpu.memory_space<vmem>>, vector<8x128xf32>
      tpu.vector_store %arg9[%c0_23, %c0_24], %28 {strides = array<i32>} : memref<8x128xf32, #tpu.memory_space<vmem>>, vector<8x128xf32>,
    } else {
    }
    return
  }
  func.func @transform_0(%arg0: i32, %arg1: i32) -> (i32, i32) {
    %c0_i32 = arith.constant 0 : i32
    return %arg0, %arg1 : i32, i32
  }
  func.func @transform_1(%arg0: i32, %arg1: i32) -> (i32, i32) {
    %c0_i32 = arith.constant 0 : i32
    %c0_i32_0 = arith.constant 0 : i32
    return %arg0, %c0_i32 : i32, i32
  }
  func.func @transform_2(%arg0: i32, %arg1: i32) -> (i32, i32) {
    %c0_i32 = arith.constant 0 : i32
    %c0_i32_0 = arith.constant 0 : i32
    return %arg0, %c0_i32 : i32, i32
  }
  func.func @transform_3(%arg0: i32, %arg1: i32) -> (i32, i32) {
    %c0_i32 = arith.constant 0 : i32
    %c0_i32_0 = arith.constant 0 : i32
    return %arg1, %c0_i32 : i32, i32
  }
  func.func @transform_4(%arg0: i32, %arg1: i32) -> (i32, i32) {
    %c0_i32 = arith.constant 0 : i32
    %c0_i32_0 = arith.constant 0 : i32
    %c0_i32_1 = arith.constant 0 : i32
    return %c0_i32, %c0_i32_0 : i32, i32
  }
  func.func @transform_5(%arg0: i32, %arg1: i32) -> (i32, i32) {
    %c0_i32 = arith.constant 0 : i32
    %c0_i32_0 = arith.constant 0 : i32
    %c0_i32_1 = arith.constant 0 : i32
    return %c0_i32, %c0_i32_0 : i32, i32
  }
  func.func @transform_6(%arg0: i32, %arg1: i32) -> (i32, i32) {
    %c0_i32 = arith.constant 0 : i32
    %c0_i32_0 = arith.constant 0 : i32
    %c0_i32_1 = arith.constant 0 : i32
    return %c0_i32, %c0_i32_0 : i32, i32
  }
  func.func @transform_7(%arg0: i32, %arg1: i32) -> (i32, i32) {
    %c0_i32 = arith.constant 0 : i32
    %c0_i32_0 = arith.constant 0 : i32
    return %arg0, %c0_i32 : i32, i32
  }
}

module attributes {stable_mosaic.version = 11 : i64} {
  func.func @_finetune_kernel(%arg0: i32, %arg1: i32, %arg2: memref<8x1024xbf16, #tpu.memory_space<vmem>>, %arg3: memref<8x1xf32, #tpu.memory_space<vmem>>, %arg4: memref<8x1xf32, #tpu.memory_space<vmem>>, %arg5: memref<1024x128xbf16, #tpu.memory_space<vmem>>, %arg6: memref<1x128xf32, #tpu.memory_space<vmem>>, %arg7: memref<128x128xbf16, #tpu.memory_space<vmem>>, %arg8: memref<1x128xf32, #tpu.memory_space<vmem>>, %arg9: memref<8x128xf32, #tpu.memory_space<vmem>>, %arg10: memref<8x128xf32, #tpu.memory_space<vmem>>) attributes {dimension_semantics = [#tpu.dimension_semantics<parallel>, #tpu.dimension_semantics<arbitrary>], iteration_bounds = array<i64: 1, 1>, scalar_prefetch = 0 : i64, scratch_operands = 1 : i64, tpu.core_type = #tpu.core_type<tc>, window_params = [{transform_indices = @transform_0, window_bounds = array<i64: 8, 1024>}, {transform_indices = @transform_1, window_bounds = array<i64: 8, 1>}, {transform_indices = @transform_2, window_bounds = array<i64: 8, 1>}, {transform_indices = @transform_3, window_bounds = array<i64: 1024, 128>}, {pipeline_mode = #tpu.pipeline_mode<synchronous>, transform_indices = @transform_4, window_bounds = array<i64: 1, 128>}, {pipeline_mode = #tpu.pipeline_mode<synchronous>, transform_indices = @transform_5, window_bounds = array<i64: 128, 128>}, {pipeline_mode = #tpu.pipeline_mode<synchronous>, transform_indices = @transform_6, window_bounds = array<i64: 1, 128>}, {transform_indices = @transform_7, window_bounds = array<i64: 8, 128>}]} {
    %c0_i32 = arith.constant 0 : i32
    %0 = arith.cmpi eq, %arg1, %c0_i32 : i32
    %1 = arith.extui %0 : i1 to i32
    %c0_i32_0 = arith.constant 0 : i32
    %2 = arith.cmpi ne, %1, %c0_i32_0 : i32
    scf.if %2 {
      %cst_10 = arith.constant 0.000000e+00 : f32
      %12 = vector.broadcast %cst_10 : f32 to vector<8x128xf32>
      %c0_11 = arith.constant 0 : index
      %c0_12 = arith.constant 0 : index
      %13 = vector.load %arg10[%c0_11, %c0_12] : memref<8x128xf32, #tpu.memory_space<vmem>>, vector<8x128xf32>
      tpu.vector_store %arg10[%c0_11, %c0_12], %12 {strides = array<i32>} : memref<8x128xf32, #tpu.memory_space<vmem>>, vector<8x128xf32>,
    } else {
    }
    %c0 = arith.constant 0 : index
    %c0_1 = arith.constant 0 : index
    %3 = vector.load %arg10[%c0, %c0_1] : memref<8x128xf32, #tpu.memory_space<vmem>>, vector<8x128xf32>
    %c0_2 = arith.constant 0 : index
    %c0_3 = arith.constant 0 : index
    %4 = vector.load %arg2[%c0_2, %c0_3] : memref<8x1024xbf16, #tpu.memory_space<vmem>>, vector<8x1024xbf16>
    %c0_4 = arith.constant 0 : index
    %c0_5 = arith.constant 0 : index
    %5 = vector.load %arg5[%c0_4, %c0_5] : memref<1024x128xbf16, #tpu.memory_space<vmem>>, vector<1024x128xbf16>
    %cst = arith.constant dense<0.000000e+00> : vector<8x128xf32>
    %6 = tpu.matmul %4, %5, %cst {dimension_numbers = #tpu.dot_dimension_numbers<[1], [0], [0], [1], [0, 0, 1, 1], [], []>} : vector<8x1024xbf16>, vector<1024x128xbf16>, vector<8x128xf32> -> vector<8x128xf32>
    %7 = arith.addf %3, %6 : vector<8x128xf32>
    %c0_6 = arith.constant 0 : index
    %c0_7 = arith.constant 0 : index
    %8 = vector.load %arg10[%c0_6, %c0_7] : memref<8x128xf32, #tpu.memory_space<vmem>>, vector<8x128xf32>
    tpu.vector_store %arg10[%c0_6, %c0_7], %7 {strides = array<i32>} : memref<8x128xf32, #tpu.memory_space<vmem>>, vector<8x128xf32>,
    %c0_i32_8 = arith.constant 0 : i32
    %9 = arith.cmpi eq, %arg1, %c0_i32_8 : i32
    %10 = arith.extui %9 : i1 to i32
    %c0_i32_9 = arith.constant 0 : i32
    %11 = arith.cmpi ne, %10, %c0_i32_9 : i32
    scf.if %11 {
      %c0_10 = arith.constant 0 : index
      %c0_11 = arith.constant 0 : index
      %12 = vector.load %arg3[%c0_10, %c0_11] : memref<8x1xf32, #tpu.memory_space<vmem>>, vector<8x1xf32>
      %c0_12 = arith.constant 0 : index
      %c0_13 = arith.constant 0 : index
      %13 = vector.load %arg10[%c0_12, %c0_13] : memref<8x128xf32, #tpu.memory_space<vmem>>, vector<8x128xf32>
      %14 = vector.broadcast %12 : vector<8x1xf32> to vector<8x128xf32>
      %15 = arith.mulf %14, %13 : vector<8x128xf32>
      %c0_14 = arith.constant 0 : index
      %c0_15 = arith.constant 0 : index
      %16 = vector.load %arg4[%c0_14, %c0_15] : memref<8x1xf32, #tpu.memory_space<vmem>>, vector<8x1xf32>
      %c0_16 = arith.constant 0 : index
      %c0_17 = arith.constant 0 : index
      %17 = vector.load %arg6[%c0_16, %c0_17] : memref<1x128xf32, #tpu.memory_space<vmem>>, vector<1x128xf32>
      %18 = vector.broadcast %16 : vector<8x1xf32> to vector<8x128xf32>
      %19 = vector.broadcast %17 : vector<1x128xf32> to vector<8x128xf32>
      %20 = arith.mulf %18, %19 : vector<8x128xf32>
      %21 = arith.addf %15, %20 : vector<8x128xf32>
      %22 = math.tanh %21 : vector<8x128xf32>
      %23 = arith.truncf %22 : vector<8x128xf32> to vector<8x128xbf16>
      %c0_18 = arith.constant 0 : index
      %c0_19 = arith.constant 0 : index
      %24 = vector.load %arg7[%c0_18, %c0_19] : memref<128x128xbf16, #tpu.memory_space<vmem>>, vector<128x128xbf16>
      %cst_20 = arith.constant dense<0.000000e+00> : vector<8x128xf32>
      %25 = tpu.matmul %23, %24, %cst_20 {dimension_numbers = #tpu.dot_dimension_numbers<[1], [0], [0], [1], [0, 0, 1, 1], [], []>} : vector<8x128xbf16>, vector<128x128xbf16>, vector<8x128xf32> -> vector<8x128xf32>
      %c0_21 = arith.constant 0 : index
      %c0_22 = arith.constant 0 : index
      %26 = vector.load %arg8[%c0_21, %c0_22] : memref<1x128xf32, #tpu.memory_space<vmem>>, vector<1x128xf32>
      %27 = vector.broadcast %26 : vector<1x128xf32> to vector<8x128xf32>
      %28 = arith.addf %25, %27 : vector<8x128xf32>
      %c0_23 = arith.constant 0 : index
      %c0_24 = arith.constant 0 : index
      %29 = vector.load %arg9[%c0_23, %c0_24] : memref<8x128xf32, #tpu.memory_space<vmem>>, vector<8x128xf32>
      tpu.vector_store %arg9[%c0_23, %c0_24], %28 {strides = array<i32>} : memref<8x128xf32, #tpu.memory_space<vmem>>, vector<8x128xf32>,
    } else {
    }
    return
  }
  func.func @transform_0(%arg0: i32, %arg1: i32) -> (i32, i32) {
    %c0_i32 = arith.constant 0 : i32
    return %arg0, %arg1 : i32, i32
  }
  func.func @transform_1(%arg0: i32, %arg1: i32) -> (i32, i32) {
    %c0_i32 = arith.constant 0 : i32
    %c0_i32_0 = arith.constant 0 : i32
    return %arg0, %c0_i32 : i32, i32
  }
  func.func @transform_2(%arg0: i32, %arg1: i32) -> (i32, i32) {
    %c0_i32 = arith.constant 0 : i32
    %c0_i32_0 = arith.constant 0 : i32
    return %arg0, %c0_i32 : i32, i32
  }
  func.func @transform_3(%arg0: i32, %arg1: i32) -> (i32, i32) {
    %c0_i32 = arith.constant 0 : i32
    %c0_i32_0 = arith.constant 0 : i32
    return %arg1, %c0_i32 : i32, i32
  }
  func.func @transform_4(%arg0: i32, %arg1: i32) -> (i32, i32) {
    %c0_i32 = arith.constant 0 : i32
    %c0_i32_0 = arith.constant 0 : i32
    %c0_i32_1 = arith.constant 0 : i32
    return %c0_i32, %c0_i32_0 : i32, i32
  }
  func.func @transform_5(%arg0: i32, %arg1: i32) -> (i32, i32) {
    %c0_i32 = arith.constant 0 : i32
    %c0_i32_0 = arith.constant 0 : i32
    %c0_i32_1 = arith.constant 0 : i32
    return %c0_i32, %c0_i32_0 : i32, i32
  }
  func.func @transform_6(%arg0: i32, %arg1: i32) -> (i32, i32) {
    %c0_i32 = arith.constant 0 : i32
    %c0_i32_0 = arith.constant 0 : i32
    %c0_i32_1 = arith.constant 0 : i32
    return %c0_i32, %c0_i32_0 : i32, i32
  }
  func.func @transform_7(%arg0: i32, %arg1: i32) -> (i32, i32) {
    %c0_i32 = arith.constant 0 : i32
    %c0_i32_0 = arith.constant 0 : i32
    return %arg0, %c0_i32 : i32, i32
  }
}

</mosaic_0001>

<bundles_post_ra>
// kernel: tpu_custom_call.1
= control target key start
LH: loop header
LB: loop body
LE: loop exit
PB: predicated region body
PF: predicated region fallthrough
CT: control target
= control target key end

     0   :  { %12 = vsyncpa [#allocation4], 0  ;;  %s1435_s0 = inlined_call_operand.hbm [shape: bf16[8,1024], index: 0, kind: input, shape index: {}]   ;;  %s1436_s1 = inlined_call_operand.vmem [shape: f32[8,1], index: 1, kind: input, shape index: {}]   ;;  %s1437_s2 = inlined_call_operand.vmem [shape: f32[8,1], index: 2, kind: input, shape index: {}]   ;;  %s1438_s3 = inlined_call_operand.hbm [shape: bf16[1024,128], index: 3, kind: input, shape index: {}]   ;;  %s1439_s4 = inlined_call_operand.vmem [shape: f32[1,128], index: 4, kind: input, shape index: {}]   ;;  %s1440_s5 = inlined_call_operand.hbm [shape: bf16[128,128], index: 5, kind: input, shape index: {}]   ;;  %s1441_s6 = inlined_call_operand.vmem [shape: f32[1,128], index: 6, kind: input, shape index: {}]   ;;  %s1442_s7 = inlined_call_operand.hbm [shape: f32[8,128], index: 7, kind: output, shape index: {}]  }
   0x1   :  { %13 = vsyncpa [#allocation7], 0 }
   0x2   :  { %14 = vsyncpa [#allocation5], 0  ;;  %s1320_s24 = smov [#allocation6]   ;;  %s1226_s28 = scalar_lea.hbm %s1438_s3, 8192 }
   0x3   :  { %s34_s25 = sshll.u32 %s1320_s24, 4  ;;  %p1227_p0 = scmp.ne.s32.totalorder %s1438_s3, %s1226_s28  ;;  %s35_s25 = int_to_ptr.vmem [resolvable:$true] %s34_s25 }
   0x4   :  { %p1230_p1 = scmp.lt.u32.totalorder %s1226_s28, %s1438_s3 }
   0x6   :  { %p1232_p2 = pnand %p1230_p1, %p1227_p0 }
   0x8   :  { %1235 = shalt.err (!%p1232_p2)
}
   0x9   :  { %s1236_s10 = scalar_lea.vmem %s35_s25, 8192  ;;  %p1241_p4 = scmp.lt.s32.totalorder %s35_s25, %s35_s25 }
   0xa   :  { %p1237_p3 = scmp.ne.s32.totalorder %s35_s25, %s1236_s10  ;;  %p1242_p5 = scmp.lt.s32.totalorder %s1236_s10, %s1236_s10 }
   0xc   :  { %p1243_p6 = por %p1242_p5, %p1241_p4 }
   0xe   :  { %p1244_p7 = pnand %p1243_p6, %p1237_p3 }
  0x10   :  { %1247 = shalt.err (!%p1244_p7)
}
  0x11   :  { %s1321_s11 = smov 64   ;;  %s1322_s12 = smov 4  }
  0x12   :  { %40 = dma.hbm_to_vmem [thread:$0]  %s1438_s3, 8192, %s35_s25, [#allocation7], %s1321_s11, %s1321_s11, %s1322_s12  }
  0x13   :  { %s1323_s15 = smov [#allocation3]   ;;  %s1324_s17 = smov [#allocation8]  }
  0x14   :  { %s21_s16 = sshll.u32 %s1323_s15, 4  ;;  %s48_s18 = sshll.u32 %s1324_s17, 4  ;;  %s22_s16 = int_to_ptr.vmem [resolvable:$true] %s21_s16  ;;  %s49_s18 = int_to_ptr.vmem [resolvable:$true] %s48_s18 }
  0x15   :  { %s1248_s21 = scalar_lea.hbm %s1435_s0, 512 }
  0x16   :  { %p1249_p8 = scmp.ne.s32.totalorder %s1435_s0, %s1248_s21  ;;  %p1252_p9 = scmp.lt.u32.totalorder %s1248_s21, %s1435_s0 }
  0x18   :  { %p1254_p10 = pnand %p1252_p9, %p1249_p8 }
  0x1a   :  { %1257 = shalt.err (!%p1254_p10)
}
  0x1b   :  { %s1258_s3 = scalar_lea.vmem %s22_s16, 512  ;;  %p1263_p12 = scmp.lt.s32.totalorder %s22_s16, %s22_s16 }
  0x1c   :  { %p1259_p11 = scmp.ne.s32.totalorder %s22_s16, %s1258_s3  ;;  %p1264_p13 = scmp.lt.s32.totalorder %s1258_s3, %s1258_s3 }
  0x1e   :  { %p1265_p0 = por %p1264_p13, %p1263_p12 }
  0x20   :  { %p1266_p1 = pnand %p1265_p0, %p1259_p11 }
  0x22   :  { %1269 = shalt.err (!%p1266_p1)
}
  0x23   :  { %24 = dma.hbm_to_vmem [thread:$0]  %s1435_s0, 512, %s22_s16, [#allocation4]  }
  0x24   :  { %s1270_s30 = scalar_lea.hbm %s1440_s5, 1024 }
  0x25   :  { %p1271_p2 = scmp.ne.s32.totalorder %s1440_s5, %s1270_s30  ;;  %p1274_p3 = scmp.lt.u32.totalorder %s1270_s30, %s1440_s5 }
  0x27   :  { %p1276_p4 = pnand %p1274_p3, %p1271_p2 }
  0x29   :  { %1279 = shalt.err (!%p1276_p4)
}
  0x2a   :  { %s1280_s14 = scalar_lea.vmem %s49_s18, 1024  ;;  %p1285_p6 = scmp.lt.s32.totalorder %s49_s18, %s49_s18 }
  0x2b   :  { %p1281_p5 = scmp.ne.s32.totalorder %s49_s18, %s1280_s14  ;;  %p1286_p7 = scmp.lt.s32.totalorder %s1280_s14, %s1280_s14 }
  0x2d   :  { %p1287_p8 = por %p1286_p7, %p1285_p6 }
  0x2f   :  { %p1288_p9 = pnand %p1287_p8, %p1281_p5 }
  0x31   :  { %1291 = shalt.err (!%p1288_p9)
}
  0x32   :  { %54 = dma.hbm_to_vmem [thread:$0]  %s1440_s5, 1024, %s49_s18, [#allocation7], %s1321_s11, %s1321_s11, %s1322_s12  }
  0x33   :  { %1314 = dma.done.wait [#allocation4], 512  }
  0x34   :  { %1315 = vsyncadd [#allocation4], 4294966784 }
  0x35   :  { %1316 = dma.done.wait [#allocation7], 9216  }
  0x36   :  { %1317 = vsyncadd [#allocation7], 4294958080  ;;  %v1325_v0 = vmov 0   ;;  %v1144_v1 = vld [vmem:[#allocation6 + $0x40] sm:$0xff]   ;;  %v1148_v5 = vld [vmem:[#allocation6 + $0x48] sm:$0xff]   ;;  %vm1327_vm0 = vmmov 0  }
  0x37   :  { %1143 = vset.pattern.permute.xlu0 %v1325_v0  ;;  %v1145_v2 = vld [vmem:[#allocation6 + $0xc0] sm:$0xff]   ;;  %1017 = vmatprep.subr.bf16.mxu0 %v1144_v1  ;;  %v1149_v6 = vld [vmem:[#allocation6 + $0xc8] sm:$0xff]   ;;  %v1152_v9 = vld [vmem:[#allocation6 + $0x50] sm:$0xff]   ;;  %s1328_s19 = smov [#allocation9]  }
  0x38   :  { %v1146_v3 = vld [vmem:[#allocation6] sm:$0xff]   ;;  %1039 = vmatprep.subr.bf16.mxu1 %v1145_v2  ;;  %v1150_v7 = vld [vmem:[#allocation6 + $0x8] sm:$0xff]   ;;  %v1153_v10 = vld [vmem:[#allocation6 + $0xd0] sm:$0xff]   ;;  %s925_s20 = sshll.u32 %s1328_s19, 4  ;;  %s926_s20 = int_to_ptr.vmem [resolvable:$true] %s925_s20 }
  0x39   :  { %v1147_v4 = vld [vmem:[#allocation6 + $0x80] sm:$0xff]   ;;  %1018 = vmatpush3.bf16.msra.mxu0 %v1146_v3  ;;  %v1151_v8 = vld [vmem:[#allocation6 + $0x88] sm:$0xff]   ;;  %v1154_v11 = vld [vmem:[#allocation6 + $0x10] sm:$0xff]   ;;  %p1297_p11 = scmp.lt.s32.totalorder %s926_s20, %s926_s20 }
  0x3a   :  { %1040 = vmatpush3.bf16.msra.mxu1 %v1147_v4  ;;  %1019 = vmatprep.subr.bf16.mxu0 %v1148_v5  ;;  %v1155_v12 = vld [vmem:[#allocation6 + $0x90] sm:$0xff]   ;;  %v1156_v13 = vld [vmem:[#allocation6 + $0x58] sm:$0xff]   ;;  %v1160_v17 = vld [vmem:[#allocation6 + $0x60] sm:$0xff]  }
  0x3b   :  { %1041 = vmatprep.subr.bf16.mxu1 %v1149_v6  ;;  %v1157_v14 = vld [vmem:[#allocation6 + $0xd8] sm:$0xff]   ;;  %v1161_v18 = vld [vmem:[#allocation6 + $0xe0] sm:$0xff]   ;;  %v1164_v21 = vld [vmem:[#allocation6 + $0x68] sm:$0xff]  }
  0x3c   :  { %v1158_v15 = vld [vmem:[#allocation6 + $0x18] sm:$0xff]   ;;  %v1162_v19 = vld [vmem:[#allocation6 + $0x20] sm:$0xff]   ;;  %v1165_v22 = vld [vmem:[#allocation6 + $0xe8] sm:$0xff]  }
  0x3d   :  { %1020 = vmatpush3.bf16.msra.mxu0 %v1150_v7  ;;  %v1159_v16 = vld [vmem:[#allocation6 + $0x98] sm:$0xff]   ;;  %v1163_v20 = vld [vmem:[#allocation6 + $0xa0] sm:$0xff]   ;;  %v1166_v23 = vld [vmem:[#allocation6 + $0x28] sm:$0xff]  }
  0x3e   :  { %1042 = vmatpush3.bf16.msra.mxu1 %v1151_v8  ;;  %1021 = vmatprep.subr.bf16.mxu0 %v1152_v9  ;;  %v1167_v24 = vld [vmem:[#allocation6 + $0xa8] sm:$0xff]   ;;  %v1168_v25 = vld [vmem:[#allocation6 + $0x70] sm:$0xff]   ;;  %v1172_v29 = vld [vmem:[#allocation6 + $0x78] sm:$0xff]  }
  0x3f   :  { %1043 = vmatprep.subr.bf16.mxu1 %v1153_v10  ;;  %v1169_v26 = vld [vmem:[#allocation6 + $0xf0] sm:$0xff]   ;;  %v1173_v30 = vld [vmem:[#allocation6 + $0xf8] sm:$0xff]   ;;  %v73_v33 = vld [vmem:[#allocation3] sm:$0xff] }
  0x40   :  { %v1170_v27 = vld [vmem:[#allocation6 + $0x30] sm:$0xff]   ;;  %v1174_v31 = vld [vmem:[#allocation6 + $0x38] sm:$0xff]   ;;  %v74_v34 = vld [vmem:[#allocation3 + $0x8] sm:$0xff]  ;;  %v935_v35 = vcombine.low %v73_v33, %v73_v33  ;;  %v936_v36 = vcombine.high %v73_v33, %v73_v33 }
  0x41   :  { %1022 = vmatpush3.bf16.msra.mxu0 %v1154_v11  ;;  %v1171_v28 = vld [vmem:[#allocation6 + $0xb0] sm:$0xff]   ;;  %v1175_v32 = vld [vmem:[#allocation6 + $0xb8] sm:$0xff]   ;;  %v937_v37 = vcombine.low %v74_v34, %v74_v34  ;;  %v938_v38 = vcombine.high %v74_v34, %v74_v34  ;;  %v1180_v39 = vld [vmem:[#allocation6 + $0x140] sm:$0xff]  }
  0x42   :  { %1044 = vmatpush3.bf16.msra.mxu1 %v1155_v12  ;;  %1023 = vmatprep.subr.bf16.mxu0 %v1156_v13  ;;  %v1181_v40 = vld [vmem:[#allocation6 + $0x1c0] sm:$0xff]   ;;  %v1184_v43 = vld [vmem:[#allocation6 + $0x148] sm:$0xff]   ;;  %v1188_v47 = vld [vmem:[#allocation6 + $0x150] sm:$0xff]  }
  0x43   :  { %1045 = vmatprep.subr.bf16.mxu1 %v1157_v14  ;;  %649 = vmatprep.mubr.bf16.mxu0 %v936_v36  ;;  %v1182_v41 = vld [vmem:[#allocation6 + $0x100] sm:$0xff]   ;;  %v1185_v44 = vld [vmem:[#allocation6 + $0x1c8] sm:$0xff]   ;;  %v1189_v48 = vld [vmem:[#allocation6 + $0x1d0] sm:$0xff]  }
  0x44   :  { %689 = vmatprep.mubr.bf16.mxu1 %v938_v38  ;;  %v1183_v42 = vld [vmem:[#allocation6 + $0x180] sm:$0xff]   ;;  %v1186_v45 = vld [vmem:[#allocation6 + $0x108] sm:$0xff]   ;;  %v1190_v49 = vld [vmem:[#allocation6 + $0x110] sm:$0xff]  }
  0x45   :  { %1024 = vmatpush3.bf16.msra.mxu0 %v1158_v15  ;;  %v1187_v46 = vld [vmem:[#allocation6 + $0x188] sm:$0xff]   ;;  %v1191_v50 = vld [vmem:[#allocation6 + $0x190] sm:$0xff]   ;;  %v1192_v51 = vld [vmem:[#allocation6 + $0x158] sm:$0xff]  }
  0x46   :  { %1046 = vmatpush3.bf16.msra.mxu1 %v1159_v16  ;;  %1025 = vmatprep.subr.bf16.mxu0 %v1160_v17  ;;  %v1193_v52 = vld [vmem:[#allocation6 + $0x1d8] sm:$0xff]   ;;  %v1196_v55 = vld [vmem:[#allocation6 + $0x160] sm:$0xff]   ;;  %v1200_v59 = vld [vmem:[#allocation6 + $0x168] sm:$0xff]   ;;  %v1326_v16 = vmov 0.0  }
  0x47   :  { %1047 = vmatprep.subr.bf16.mxu1 %v1161_v18  ;;  %v1194_v53 = vld [vmem:[#allocation6 + $0x118] sm:$0xff]   ;;  %v1197_v56 = vld [vmem:[#allocation6 + $0x1e0] sm:$0xff]   ;;  %v1201_v60 = vld [vmem:[#allocation6 + $0x1e8] sm:$0xff]  }
  0x48   :  { %v1195_v54 = vld [vmem:[#allocation6 + $0x198] sm:$0xff]   ;;  %v1198_v57 = vld [vmem:[#allocation6 + $0x120] sm:$0xff]   ;;  %v1202_v61 = vld [vmem:[#allocation6 + $0x128] sm:$0xff]  }
  0x49   :  { %1026 = vmatpush3.bf16.msra.mxu0 %v1162_v19  ;;  %v1199_v58 = vld [vmem:[#allocation6 + $0x1a0] sm:$0xff]   ;;  %v1203_v62 = vld [vmem:[#allocation6 + $0x1a8] sm:$0xff]   ;;  %v1204_v63 = vld [vmem:[#allocation6 + $0x170] sm:$0xff]  }
  0x4a   :  { %1048 = vmatpush3.bf16.msra.mxu1 %v1163_v20  ;;  %1027 = vmatprep.subr.bf16.mxu0 %v1164_v21  ;;  %v1205_v0 = vld [vmem:[#allocation6 + $0x1f0] sm:$0xff]   ;;  %v1208_v3 = vld [vmem:[#allocation6 + $0x178] sm:$0xff]   ;;  %v782_v11 = vld [vmem:[%s1436_s1] sm:$0xff] }
  0x4b   :  { %1049 = vmatprep.subr.bf16.mxu1 %v1165_v22  ;;  %v1206_v1 = vld [vmem:[#allocation6 + $0x130] sm:$0xff]   ;;  %v1209_v4 = vld [vmem:[#allocation6 + $0x1f8] sm:$0xff]   ;;  %v790_v14 = vld [vmem:[%s1437_s2] sm:$0xff]  ;;  %786 = vperm.xlu0 %1143, %v782_v11  }
  0x4c   :  { %v1207_v2 = vld [vmem:[#allocation6 + $0x1b0] sm:$0xff]   ;;  %v1210_v5 = vld [vmem:[#allocation6 + $0x138] sm:$0xff]   ;;  %v1216_v15 = vld [vmem:[#allocation8] sm:$0xff]  }
  0x4d   :  { %1028 = vmatpush3.bf16.msra.mxu0 %v1166_v23  ;;  %v1211_v6 = vld [vmem:[#allocation6 + $0x1b8] sm:$0xff]   ;;  %v75_v7 = vld [vmem:[#allocation3 + $0x10] sm:$0xff]  ;;  %v1217_v17 = vld [vmem:[#allocation8 + $0x8] sm:$0xff]  }
  0x4e   :  { %1050 = vmatpush3.bf16.msra.mxu1 %v1167_v24  ;;  %1029 = vmatprep.subr.bf16.mxu0 %v1168_v25  ;;  %v939_v8 = vcombine.low %v75_v7, %v75_v7  ;;  %v940_v9 = vcombine.high %v75_v7, %v75_v7  ;;  %v76_v10 = vld [vmem:[#allocation3 + $0x18] sm:$0xff]  ;;  %v1218_v18 = vld [vmem:[#allocation8 + $0x10] sm:$0xff]   ;;  %v1220_v20 = vld [vmem:[#allocation8 + $0x20] sm:$0xff]  }
  0x4f   :  { %1051 = vmatprep.subr.bf16.mxu1 %v1169_v26  ;;  %v941_v12 = vcombine.low %v76_v10, %v76_v10  ;;  %v942_v13 = vcombine.high %v76_v10, %v76_v10  ;;  %794 = vperm.xlu0 %1143, %v790_v14   ;;  %v1219_v19 = vld [vmem:[#allocation8 + $0x18] sm:$0xff]   ;;  %v1221_v21 = vld [vmem:[#allocation8 + $0x28] sm:$0xff]   ;;  %v1222_v22 = vld [vmem:[#allocation8 + $0x30] sm:$0xff]  }
  0x50   :  { %v1223_v23 = vld [vmem:[#allocation8 + $0x38] sm:$0xff]  }
  0x51   :  { %1030 = vmatpush3.bf16.msra.mxu0 %v1170_v27 }
  0x52   :  { %1052 = vmatpush3.bf16.msra.mxu1 %v1171_v28  ;;  %1031 = vmatprep.subr.bf16.mxu0 %v1172_v29 }
  0x53   :  { %1053 = vmatprep.subr.bf16.mxu1 %v1173_v30 }
  0x55   :  { %1032 = vmatpush3.bf16.msra.mxu0 %v1174_v31 }
  0x56   :  { %1054 = vmatpush3.bf16.msra.mxu1 %v1175_v32  ;;  %1061 = vmatprep.subr.bf16.mxu0 %v1180_v39 }
  0x57   :  { %1083 = vmatprep.subr.bf16.mxu1 %v1181_v40 }
  0x58   :  { %650 = vmatmul.mubr.bf16.vlgmr.msra.gmra.mrb[0].mxu0 %v935_v35 }
  0x59   :  { %690 = vmatmul.mubr.bf16.vlgmr.msra.gmra.mrb[0].mxu1 %v937_v37  ;;  %1062 = vmatpush3.bf16.msra.mxu0 %v1182_v41 }
  0x5a   :  { %1084 = vmatpush3.bf16.msra.mxu1 %v1183_v42  ;;  %1063 = vmatprep.subr.bf16.mxu0 %v1184_v43 }
  0x5b   :  { %1085 = vmatprep.subr.bf16.mxu1 %v1185_v44  ;;  %729 = vmatprep.mubr.bf16.mxu0 %v940_v9 }
  0x5c   :  { %769 = vmatprep.mubr.bf16.mxu1 %v942_v13 }
  0x5d   :  { %1064 = vmatpush3.bf16.msra.mxu0 %v1186_v45 }
  0x5e   :  { %1086 = vmatpush3.bf16.msra.mxu1 %v1187_v46  ;;  %1065 = vmatprep.subr.bf16.mxu0 %v1188_v47  ;;  %v1007_v47 = vld [vmem:[%s1439_s4] ss:$0 sm:$0xff]  ;;  %s1292_s4 = scalar_lea.vmem %s926_s20, 128 }
  0x5f   :  { %1087 = vmatprep.subr.bf16.mxu1 %v1189_v48  ;;  %p1293_p10 = scmp.ne.s32.totalorder %s926_s20, %s1292_s4  ;;  %p1298_p12 = scmp.lt.s32.totalorder %s1292_s4, %s1292_s4 }
  0x61   :  { %1066 = vmatpush3.bf16.msra.mxu0 %v1190_v49  ;;  %p1299_p13 = por %p1298_p12, %p1297_p11 }
  0x62   :  { %1088 = vmatpush3.bf16.msra.mxu1 %v1191_v50  ;;  %1067 = vmatprep.subr.bf16.mxu0 %v1192_v51 }
  0x63   :  { %1089 = vmatprep.subr.bf16.mxu1 %v1193_v52  ;;  %p1300_p0 = pnand %p1299_p13, %p1293_p10 }
  0x65   :  { %1068 = vmatpush3.bf16.msra.mxu0 %v1194_v53 }
  0x66   :  { %1090 = vmatpush3.bf16.msra.mxu1 %v1195_v54  ;;  %1069 = vmatprep.subr.bf16.mxu0 %v1196_v55  ;;  %v1008_v55 = vld [vmem:[%s1441_s6] ss:$0 sm:$0xff] }
  0x67   :  { %1091 = vmatprep.subr.bf16.mxu1 %v1197_v56 }
  0x69   :  { %1070 = vmatpush3.bf16.msra.mxu0 %v1198_v57 }
  0x6a   :  { %1092 = vmatpush3.bf16.msra.mxu1 %v1199_v58  ;;  %1071 = vmatprep.subr.bf16.mxu0 %v1200_v59 }
  0x6b   :  { %1093 = vmatprep.subr.bf16.mxu1 %v1201_v60 }
  0x6d   :  { %1072 = vmatpush3.bf16.msra.mxu0 %v1202_v61 }
  0x6e   :  { %1094 = vmatpush3.bf16.msra.mxu1 %v1203_v62  ;;  %1073 = vmatprep.subr.bf16.mxu0 %v1204_v63 }
  0x6f   :  { %1095 = vmatprep.subr.bf16.mxu1 %v1205_v0 }
  0x71   :  { %1074 = vmatpush3.bf16.msra.mxu0 %v1206_v1 }
  0x72   :  { %1096 = vmatpush3.bf16.msra.mxu1 %v1207_v2  ;;  %1075 = vmatprep.subr.bf16.mxu0 %v1208_v3 }
  0x73   :  { %1097 = vmatprep.subr.bf16.mxu1 %v1209_v4 }
  0x75   :  { %1076 = vmatpush3.bf16.msra.mxu0 %v1210_v5 }
  0x76   :  { %1098 = vmatpush3.bf16.msra.mxu1 %v1211_v6  ;;  %1114 = vmatprep.subr.bf16.mxu0 %v1326_v16 }
  0x78   :  { %730 = vmatmul.mubr.bf16.vlgmr.msra.gmra.mrb[4].mxu0 %v939_v8 }
  0x79   :  { %770 = vmatmul.mubr.bf16.vlgmr.msra.gmra.mrb[4].mxu1 %v941_v12  ;;  %1115 = vmatpush3.bf16.msra.mxu0 %v1216_v15 }
  0x7a   :  { %1116 = vmatprep.subr.bf16.mxu0 %v1326_v16  ;;  %1130 = vmatprep.mubr.msk.bf16.mxu0 %vm1327_vm0, %v1326_v16 }
  0x7d   :  { %1117 = vmatpush3.bf16.msra.mxu0 %v1217_v17 }
  0x7e   :  { %1118 = vmatprep.subr.bf16.mxu0 %v1326_v16 }
  0x81   :  { %1119 = vmatpush3.bf16.msra.mxu0 %v1218_v18 }
  0x82   :  { %1120 = vmatprep.subr.bf16.mxu0 %v1326_v16 }
  0x85   :  { %1121 = vmatpush3.bf16.msra.mxu0 %v1219_v19 }
  0x86   :  { %1122 = vmatprep.subr.bf16.mxu0 %v1326_v16 }
  0x89   :  { %1123 = vmatpush3.bf16.msra.mxu0 %v1220_v20 }
  0x8a   :  { %1124 = vmatprep.subr.bf16.mxu0 %v1326_v16 }
  0x8d   :  { %1125 = vmatpush3.bf16.msra.mxu0 %v1221_v21 }
  0x8e   :  { %1126 = vmatprep.subr.bf16.mxu0 %v1326_v16 }
  0x91   :  { %1127 = vmatpush3.bf16.msra.mxu0 %v1222_v22 }
  0x92   :  { %1128 = vmatprep.subr.bf16.mxu0 %v1326_v16 }
  0x95   :  { %1129 = vmatpush3.bf16.msra.mxu0 %v1223_v23 }
  0xca   :  { %v787_v35 = vpop.permute.xlu0 %786 }
  0xce   :  { %v795_v48 = vpop.permute.xlu0 %794 }
  0xcf   :  { %v803_v51 = vmul.f32 %v1007_v47, %v795_v48 }
 0x12b   :  { %v1033_v24 = vpop.f32.mrb[0].mxu0 }
 0x12c   :  { %v1055_v25 = vpop.f32.mrb[0].mxu1  ;;  %v1034_v26 = vpop.f32.mrb[1].mxu0 }
 0x12d   :  { %v1056_v27 = vpop.f32.mrb[1].mxu1  ;;  %v1035_v28 = vadd.f32 %v1034_v26, %v1033_v24  ;;  %v1036_v30 = vpop.f32.mrb[2].mxu0 }
 0x12e   :  { %v1057_v29 = vadd.f32 %v1056_v27, %v1055_v25  ;;  %v1058_v31 = vpop.f32.mrb[2].mxu1  ;;  %v1037_v32 = vpop.f32.mrb[3].mxu0 }
 0x12f   :  { %v1059_v33 = vpop.f32.mrb[3].mxu1 }
 0x130   :  { %v692_v34 = vadd.f32 %v1057_v29, %v1035_v28 }
 0x14b   :  { %v1077_v36 = vpop.f32.mrb[4].mxu0 }
 0x14c   :  { %v1099_v37 = vpop.f32.mrb[4].mxu1  ;;  %v1078_v38 = vpop.f32.mrb[5].mxu0 }
 0x14d   :  { %v1100_v39 = vpop.f32.mrb[5].mxu1  ;;  %v1079_v40 = vadd.f32 %v1078_v38, %v1077_v36  ;;  %v1080_v42 = vpop.f32.mrb[6].mxu0 }
 0x14e   :  { %v1101_v41 = vadd.f32 %v1100_v39, %v1099_v37  ;;  %v1102_v43 = vpop.f32.mrb[6].mxu1  ;;  %v1081_v44 = vpop.f32.mrb[7].mxu0 }
 0x14f   :  { %v1103_v45 = vpop.f32.mrb[7].mxu1  ;;  %v732_v46 = vadd.f32 %v1079_v40, %v692_v34 }
 0x151   :  { %v772_v49 = vadd.f32 %v1101_v41, %v732_v46 }
 0x153   :  { %v789_v50 = vmul.f32 %v787_v35, %v772_v49 }
 0x155   :  { %v804_v52 = vadd.f32 %v803_v51, %v789_v50 }
 0x157   :  { %1224 = vtanh.f32 %v804_v52 }
 0x161   :  { %v1225_v53 = vpop.eup %1224 }
 0x162   :  { %v806_v54 = vpack.c.bf16 %v1225_v53, %v1225_v53 }
 0x164   :  { %1131 = vmatmul.mubr.bf16.vlgmr.msra.gmra.mrb[8].mxu0 %v806_v54 }
 0x237   :  { %v912_v56 = vpop.f32.mrb[8].mxu0 }
 0x238   :  { %v913_v57 = vadd.f32 %v1008_v55, %v912_v56  ;;  %v1132_v58 = vpop.f32.mrb[9].mxu0 }
 0x239   :  { %v915_v59 = vpop.f32.mrb[10].mxu0 }
 0x23a   :  { %918 = vst [vmem:[#allocation9] sm:$0xff] %v913_v57  ;;  %v1133_v60 = vpop.f32.mrb[11].mxu0 }
 0x23b   :  { %1303 = shalt.err (!%p1300_p0)
}
 0x23c   :  { %s1304_s6 = scalar_lea.hbm %s1442_s7, 128 }
 0x23d   :  { %p1305_p1 = scmp.ne.s32.totalorder %s1442_s7, %s1304_s6  ;;  %p1308_p2 = scmp.lt.u32.totalorder %s1304_s6, %s1442_s7 }
 0x23f   :  { %p1310_p3 = pnand %p1308_p2, %p1305_p1 }
 0x241   :  { %1313 = shalt.err (!%p1310_p3)
}
 0x242   :  { %928 = dma.vmem_to_hbm [thread:$0]  %s926_s20, 128, %s1442_s7, [#allocation5]  }
 0x243   :  { %1318 = dma.done.wait [#allocation5], 128  }
 0x244   :  { %1319 = vsyncadd [#allocation5], 4294967168 }
 0x245   :  { %932 = vsyncpa [#allocation4], 1 }
 0x246   :  { %933 = vsyncpa [#allocation7], 1 }
 0x247   :  { %934 = vsyncpa [#allocation5], 1 }

// kernel: tpu_custom_call.1
= control target key start
LH: loop header
LB: loop body
LE: loop exit
PB: predicated region body
PF: predicated region fallthrough
CT: control target
= control target key end

     0   :  { %12 = vsyncpa [#allocation4], 0  ;;  %s1435_s0 = inlined_call_operand.hbm [shape: bf16[8,1024], index: 0, kind: input, shape index: {}]   ;;  %s1436_s1 = inlined_call_operand.vmem [shape: f32[8,1], index: 1, kind: input, shape index: {}]   ;;  %s1437_s2 = inlined_call_operand.vmem [shape: f32[8,1], index: 2, kind: input, shape index: {}]   ;;  %s1438_s3 = inlined_call_operand.hbm [shape: bf16[1024,128], index: 3, kind: input, shape index: {}]   ;;  %s1439_s4 = inlined_call_operand.vmem [shape: f32[1,128], index: 4, kind: input, shape index: {}]   ;;  %s1440_s5 = inlined_call_operand.hbm [shape: bf16[128,128], index: 5, kind: input, shape index: {}]   ;;  %s1441_s6 = inlined_call_operand.vmem [shape: f32[1,128], index: 6, kind: input, shape index: {}]   ;;  %s1442_s7 = inlined_call_operand.hbm [shape: f32[8,128], index: 7, kind: output, shape index: {}]  }
   0x1   :  { %13 = vsyncpa [#allocation7], 0 }
   0x2   :  { %14 = vsyncpa [#allocation5], 0  ;;  %s1320_s24 = smov [#allocation6]   ;;  %s1226_s28 = scalar_lea.hbm %s1438_s3, 8192 }
   0x3   :  { %s34_s25 = sshll.u32 %s1320_s24, 4  ;;  %p1227_p0 = scmp.ne.s32.totalorder %s1438_s3, %s1226_s28  ;;  %s35_s25 = int_to_ptr.vmem [resolvable:$true] %s34_s25 }
   0x4   :  { %p1230_p1 = scmp.lt.u32.totalorder %s1226_s28, %s1438_s3 }
   0x6   :  { %p1232_p2 = pnand %p1230_p1, %p1227_p0 }
   0x8   :  { %1235 = shalt.err (!%p1232_p2)
}
   0x9   :  { %s1236_s10 = scalar_lea.vmem %s35_s25, 8192  ;;  %p1241_p4 = scmp.lt.s32.totalorder %s35_s25, %s35_s25 }
   0xa   :  { %p1237_p3 = scmp.ne.s32.totalorder %s35_s25, %s1236_s10  ;;  %p1242_p5 = scmp.lt.s32.totalorder %s1236_s10, %s1236_s10 }
   0xc   :  { %p1243_p6 = por %p1242_p5, %p1241_p4 }
   0xe   :  { %p1244_p7 = pnand %p1243_p6, %p1237_p3 }
  0x10   :  { %1247 = shalt.err (!%p1244_p7)
}
  0x11   :  { %s1321_s11 = smov 64   ;;  %s1322_s12 = smov 4  }
  0x12   :  { %40 = dma.hbm_to_vmem [thread:$0]  %s1438_s3, 8192, %s35_s25, [#allocation7], %s1321_s11, %s1321_s11, %s1322_s12  }
  0x13   :  { %s1323_s15 = smov [#allocation3]   ;;  %s1324_s17 = smov [#allocation8]  }
  0x14   :  { %s21_s16 = sshll.u32 %s1323_s15, 4  ;;  %s48_s18 = sshll.u32 %s1324_s17, 4  ;;  %s22_s16 = int_to_ptr.vmem [resolvable:$true] %s21_s16  ;;  %s49_s18 = int_to_ptr.vmem [resolvable:$true] %s48_s18 }
  0x15   :  { %s1248_s21 = scalar_lea.hbm %s1435_s0, 512 }
  0x16   :  { %p1249_p8 = scmp.ne.s32.totalorder %s1435_s0, %s1248_s21  ;;  %p1252_p9 = scmp.lt.u32.totalorder %s1248_s21, %s1435_s0 }
  0x18   :  { %p1254_p10 = pnand %p1252_p9, %p1249_p8 }
  0x1a   :  { %1257 = shalt.err (!%p1254_p10)
}
  0x1b   :  { %s1258_s3 = scalar_lea.vmem %s22_s16, 512  ;;  %p1263_p12 = scmp.lt.s32.totalorder %s22_s16, %s22_s16 }
  0x1c   :  { %p1259_p11 = scmp.ne.s32.totalorder %s22_s16, %s1258_s3  ;;  %p1264_p13 = scmp.lt.s32.totalorder %s1258_s3, %s1258_s3 }
  0x1e   :  { %p1265_p0 = por %p1264_p13, %p1263_p12 }
  0x20   :  { %p1266_p1 = pnand %p1265_p0, %p1259_p11 }
  0x22   :  { %1269 = shalt.err (!%p1266_p1)
}
  0x23   :  { %24 = dma.hbm_to_vmem [thread:$0]  %s1435_s0, 512, %s22_s16, [#allocation4]  }
  0x24   :  { %s1270_s30 = scalar_lea.hbm %s1440_s5, 1024 }
  0x25   :  { %p1271_p2 = scmp.ne.s32.totalorder %s1440_s5, %s1270_s30  ;;  %p1274_p3 = scmp.lt.u32.totalorder %s1270_s30, %s1440_s5 }
  0x27   :  { %p1276_p4 = pnand %p1274_p3, %p1271_p2 }
  0x29   :  { %1279 = shalt.err (!%p1276_p4)
}
  0x2a   :  { %s1280_s14 = scalar_lea.vmem %s49_s18, 1024  ;;  %p1285_p6 = scmp.lt.s32.totalorder %s49_s18, %s49_s18 }
  0x2b   :  { %p1281_p5 = scmp.ne.s32.totalorder %s49_s18, %s1280_s14  ;;  %p1286_p7 = scmp.lt.s32.totalorder %s1280_s14, %s1280_s14 }
  0x2d   :  { %p1287_p8 = por %p1286_p7, %p1285_p6 }
  0x2f   :  { %p1288_p9 = pnand %p1287_p8, %p1281_p5 }
  0x31   :  { %1291 = shalt.err (!%p1288_p9)
}
  0x32   :  { %54 = dma.hbm_to_vmem [thread:$0]  %s1440_s5, 1024, %s49_s18, [#allocation7], %s1321_s11, %s1321_s11, %s1322_s12  }
  0x33   :  { %1314 = dma.done.wait [#allocation4], 512  }
  0x34   :  { %1315 = vsyncadd [#allocation4], 4294966784 }
  0x35   :  { %1316 = dma.done.wait [#allocation7], 9216  }
  0x36   :  { %1317 = vsyncadd [#allocation7], 4294958080  ;;  %v1325_v0 = vmov 0   ;;  %v1144_v1 = vld [vmem:[#allocation6 + $0x40] sm:$0xff]   ;;  %v1148_v5 = vld [vmem:[#allocation6 + $0x48] sm:$0xff]   ;;  %vm1327_vm0 = vmmov 0  }
  0x37   :  { %1143 = vset.pattern.permute.xlu0 %v1325_v0  ;;  %v1145_v2 = vld [vmem:[#allocation6 + $0xc0] sm:$0xff]   ;;  %1017 = vmatprep.subr.bf16.mxu0 %v1144_v1  ;;  %v1149_v6 = vld [vmem:[#allocation6 + $0xc8] sm:$0xff]   ;;  %v1152_v9 = vld [vmem:[#allocation6 + $0x50] sm:$0xff]   ;;  %s1328_s19 = smov [#allocation9]  }
  0x38   :  { %v1146_v3 = vld [vmem:[#allocation6] sm:$0xff]   ;;  %1039 = vmatprep.subr.bf16.mxu1 %v1145_v2  ;;  %v1150_v7 = vld [vmem:[#allocation6 + $0x8] sm:$0xff]   ;;  %v1153_v10 = vld [vmem:[#allocation6 + $0xd0] sm:$0xff]   ;;  %s925_s20 = sshll.u32 %s1328_s19, 4  ;;  %s926_s20 = int_to_ptr.vmem [resolvable:$true] %s925_s20 }
  0x39   :  { %v1147_v4 = vld [vmem:[#allocation6 + $0x80] sm:$0xff]   ;;  %1018 = vmatpush3.bf16.msra.mxu0 %v1146_v3  ;;  %v1151_v8 = vld [vmem:[#allocation6 + $0x88] sm:$0xff]   ;;  %v1154_v11 = vld [vmem:[#allocation6 + $0x10] sm:$0xff]   ;;  %p1297_p11 = scmp.lt.s32.totalorder %s926_s20, %s926_s20 }
  0x3a   :  { %1040 = vmatpush3.bf16.msra.mxu1 %v1147_v4  ;;  %1019 = vmatprep.subr.bf16.mxu0 %v1148_v5  ;;  %v1155_v12 = vld [vmem:[#allocation6 + $0x90] sm:$0xff]   ;;  %v1156_v13 = vld [vmem:[#allocation6 + $0x58] sm:$0xff]   ;;  %v1160_v17 = vld [vmem:[#allocation6 + $0x60] sm:$0xff]  }
  0x3b   :  { %1041 = vmatprep.subr.bf16.mxu1 %v1149_v6  ;;  %v1157_v14 = vld [vmem:[#allocation6 + $0xd8] sm:$0xff]   ;;  %v1161_v18 = vld [vmem:[#allocation6 + $0xe0] sm:$0xff]   ;;  %v1164_v21 = vld [vmem:[#allocation6 + $0x68] sm:$0xff]  }
  0x3c   :  { %v1158_v15 = vld [vmem:[#allocation6 + $0x18] sm:$0xff]   ;;  %v1162_v19 = vld [vmem:[#allocation6 + $0x20] sm:$0xff]   ;;  %v1165_v22 = vld [vmem:[#allocation6 + $0xe8] sm:$0xff]  }
  0x3d   :  { %1020 = vmatpush3.bf16.msra.mxu0 %v1150_v7  ;;  %v1159_v16 = vld [vmem:[#allocation6 + $0x98] sm:$0xff]   ;;  %v1163_v20 = vld [vmem:[#allocation6 + $0xa0] sm:$0xff]   ;;  %v1166_v23 = vld [vmem:[#allocation6 + $0x28] sm:$0xff]  }
  0x3e   :  { %1042 = vmatpush3.bf16.msra.mxu1 %v1151_v8  ;;  %1021 = vmatprep.subr.bf16.mxu0 %v1152_v9  ;;  %v1167_v24 = vld [vmem:[#allocation6 + $0xa8] sm:$0xff]   ;;  %v1168_v25 = vld [vmem:[#allocation6 + $0x70] sm:$0xff]   ;;  %v1172_v29 = vld [vmem:[#allocation6 + $0x78] sm:$0xff]  }
  0x3f   :  { %1043 = vmatprep.subr.bf16.mxu1 %v1153_v10  ;;  %v1169_v26 = vld [vmem:[#allocation6 + $0xf0] sm:$0xff]   ;;  %v1173_v30 = vld [vmem:[#allocation6 + $0xf8] sm:$0xff]   ;;  %v73_v33 = vld [vmem:[#allocation3] sm:$0xff] }
  0x40   :  { %v1170_v27 = vld [vmem:[#allocation6 + $0x30] sm:$0xff]   ;;  %v1174_v31 = vld [vmem:[#allocation6 + $0x38] sm:$0xff]   ;;  %v74_v34 = vld [vmem:[#allocation3 + $0x8] sm:$0xff]  ;;  %v935_v35 = vcombine.low %v73_v33, %v73_v33  ;;  %v936_v36 = vcombine.high %v73_v33, %v73_v33 }
  0x41   :  { %1022 = vmatpush3.bf16.msra.mxu0 %v1154_v11  ;;  %v1171_v28 = vld [vmem:[#allocation6 + $0xb0] sm:$0xff]   ;;  %v1175_v32 = vld [vmem:[#allocation6 + $0xb8] sm:$0xff]   ;;  %v937_v37 = vcombine.low %v74_v34, %v74_v34  ;;  %v938_v38 = vcombine.high %v74_v34, %v74_v34  ;;  %v1180_v39 = vld [vmem:[#allocation6 + $0x140] sm:$0xff]  }
  0x42   :  { %1044 = vmatpush3.bf16.msra.mxu1 %v1155_v12  ;;  %1023 = vmatprep.subr.bf16.mxu0 %v1156_v13  ;;  %v1181_v40 = vld [vmem:[#allocation6 + $0x1c0] sm:$0xff]   ;;  %v1184_v43 = vld [vmem:[#allocation6 + $0x148] sm:$0xff]   ;;  %v1188_v47 = vld [vmem:[#allocation6 + $0x150] sm:$0xff]  }
  0x43   :  { %1045 = vmatprep.subr.bf16.mxu1 %v1157_v14  ;;  %649 = vmatprep.mubr.bf16.mxu0 %v936_v36  ;;  %v1182_v41 = vld [vmem:[#allocation6 + $0x100] sm:$0xff]   ;;  %v1185_v44 = vld [vmem:[#allocation6 + $0x1c8] sm:$0xff]   ;;  %v1189_v48 = vld [vmem:[#allocation6 + $0x1d0] sm:$0xff]  }
  0x44   :  { %689 = vmatprep.mubr.bf16.mxu1 %v938_v38  ;;  %v1183_v42 = vld [vmem:[#allocation6 + $0x180] sm:$0xff]   ;;  %v1186_v45 = vld [vmem:[#allocation6 + $0x108] sm:$0xff]   ;;  %v1190_v49 = vld [vmem:[#allocation6 + $0x110] sm:$0xff]  }
  0x45   :  { %1024 = vmatpush3.bf16.msra.mxu0 %v1158_v15  ;;  %v1187_v46 = vld [vmem:[#allocation6 + $0x188] sm:$0xff]   ;;  %v1191_v50 = vld [vmem:[#allocation6 + $0x190] sm:$0xff]   ;;  %v1192_v51 = vld [vmem:[#allocation6 + $0x158] sm:$0xff]  }
  0x46   :  { %1046 = vmatpush3.bf16.msra.mxu1 %v1159_v16  ;;  %1025 = vmatprep.subr.bf16.mxu0 %v1160_v17  ;;  %v1193_v52 = vld [vmem:[#allocation6 + $0x1d8] sm:$0xff]   ;;  %v1196_v55 = vld [vmem:[#allocation6 + $0x160] sm:$0xff]   ;;  %v1200_v59 = vld [vmem:[#allocation6 + $0x168] sm:$0xff]   ;;  %v1326_v16 = vmov 0.0  }
  0x47   :  { %1047 = vmatprep.subr.bf16.mxu1 %v1161_v18  ;;  %v1194_v53 = vld [vmem:[#allocation6 + $0x118] sm:$0xff]   ;;  %v1197_v56 = vld [vmem:[#allocation6 + $0x1e0] sm:$0xff]   ;;  %v1201_v60 = vld [vmem:[#allocation6 + $0x1e8] sm:$0xff]  }
  0x48   :  { %v1195_v54 = vld [vmem:[#allocation6 + $0x198] sm:$0xff]   ;;  %v1198_v57 = vld [vmem:[#allocation6 + $0x120] sm:$0xff]   ;;  %v1202_v61 = vld [vmem:[#allocation6 + $0x128] sm:$0xff]  }
  0x49   :  { %1026 = vmatpush3.bf16.msra.mxu0 %v1162_v19  ;;  %v1199_v58 = vld [vmem:[#allocation6 + $0x1a0] sm:$0xff]   ;;  %v1203_v62 = vld [vmem:[#allocation6 + $0x1a8] sm:$0xff]   ;;  %v1204_v63 = vld [vmem:[#allocation6 + $0x170] sm:$0xff]  }
  0x4a   :  { %1048 = vmatpush3.bf16.msra.mxu1 %v1163_v20  ;;  %1027 = vmatprep.subr.bf16.mxu0 %v1164_v21  ;;  %v1205_v0 = vld [vmem:[#allocation6 + $0x1f0] sm:$0xff]   ;;  %v1208_v3 = vld [vmem:[#allocation6 + $0x178] sm:$0xff]   ;;  %v782_v11 = vld [vmem:[%s1436_s1] sm:$0xff] }
  0x4b   :  { %1049 = vmatprep.subr.bf16.mxu1 %v1165_v22  ;;  %v1206_v1 = vld [vmem:[#allocation6 + $0x130] sm:$0xff]   ;;  %v1209_v4 = vld [vmem:[#allocation6 + $0x1f8] sm:$0xff]   ;;  %v790_v14 = vld [vmem:[%s1437_s2] sm:$0xff]  ;;  %786 = vperm.xlu0 %1143, %v782_v11  }
  0x4c   :  { %v1207_v2 = vld [vmem:[#allocation6 + $0x1b0] sm:$0xff]   ;;  %v1210_v5 = vld [vmem:[#allocation6 + $0x138] sm:$0xff]   ;;  %v1216_v15 = vld [vmem:[#allocation8] sm:$0xff]  }
  0x4d   :  { %1028 = vmatpush3.bf16.msra.mxu0 %v1166_v23  ;;  %v1211_v6 = vld [vmem:[#allocation6 + $0x1b8] sm:$0xff]   ;;  %v75_v7 = vld [vmem:[#allocation3 + $0x10] sm:$0xff]  ;;  %v1217_v17 = vld [vmem:[#allocation8 + $0x8] sm:$0xff]  }
  0x4e   :  { %1050 = vmatpush3.bf16.msra.mxu1 %v1167_v24  ;;  %1029 = vmatprep.subr.bf16.mxu0 %v1168_v25  ;;  %v939_v8 = vcombine.low %v75_v7, %v75_v7  ;;  %v940_v9 = vcombine.high %v75_v7, %v75_v7  ;;  %v76_v10 = vld [vmem:[#allocation3 + $0x18] sm:$0xff]  ;;  %v1218_v18 = vld [vmem:[#allocation8 + $0x10] sm:$0xff]   ;;  %v1220_v20 = vld [vmem:[#allocation8 + $0x20] sm:$0xff]  }
  0x4f   :  { %1051 = vmatprep.subr.bf16.mxu1 %v1169_v26  ;;  %v941_v12 = vcombine.low %v76_v10, %v76_v10  ;;  %v942_v13 = vcombine.high %v76_v10, %v76_v10  ;;  %794 = vperm.xlu0 %1143, %v790_v14   ;;  %v1219_v19 = vld [vmem:[#allocation8 + $0x18] sm:$0xff]   ;;  %v1221_v21 = vld [vmem:[#allocation8 + $0x28] sm:$0xff]   ;;  %v1222_v22 = vld [vmem:[#allocation8 + $0x30] sm:$0xff]  }
  0x50   :  { %v1223_v23 = vld [vmem:[#allocation8 + $0x38] sm:$0xff]  }
  0x51   :  { %1030 = vmatpush3.bf16.msra.mxu0 %v1170_v27 }
  0x52   :  { %1052 = vmatpush3.bf16.msra.mxu1 %v1171_v28  ;;  %1031 = vmatprep.subr.bf16.mxu0 %v1172_v29 }
  0x53   :  { %1053 = vmatprep.subr.bf16.mxu1 %v1173_v30 }
  0x55   :  { %1032 = vmatpush3.bf16.msra.mxu0 %v1174_v31 }
  0x56   :  { %1054 = vmatpush3.bf16.msra.mxu1 %v1175_v32  ;;  %1061 = vmatprep.subr.bf16.mxu0 %v1180_v39 }
  0x57   :  { %1083 = vmatprep.subr.bf16.mxu1 %v1181_v40 }
  0x58   :  { %650 = vmatmul.mubr.bf16.vlgmr.msra.gmra.mrb[0].mxu0 %v935_v35 }
  0x59   :  { %690 = vmatmul.mubr.bf16.vlgmr.msra.gmra.mrb[0].mxu1 %v937_v37  ;;  %1062 = vmatpush3.bf16.msra.mxu0 %v1182_v41 }
  0x5a   :  { %1084 = vmatpush3.bf16.msra.mxu1 %v1183_v42  ;;  %1063 = vmatprep.subr.bf16.mxu0 %v1184_v43 }
  0x5b   :  { %1085 = vmatprep.subr.bf16.mxu1 %v1185_v44  ;;  %729 = vmatprep.mubr.bf16.mxu0 %v940_v9 }
  0x5c   :  { %769 = vmatprep.mubr.bf16.mxu1 %v942_v13 }
  0x5d   :  { %1064 = vmatpush3.bf16.msra.mxu0 %v1186_v45 }
  0x5e   :  { %1086 = vmatpush3.bf16.msra.mxu1 %v1187_v46  ;;  %1065 = vmatprep.subr.bf16.mxu0 %v1188_v47  ;;  %v1007_v47 = vld [vmem:[%s1439_s4] ss:$0 sm:$0xff]  ;;  %s1292_s4 = scalar_lea.vmem %s926_s20, 128 }
  0x5f   :  { %1087 = vmatprep.subr.bf16.mxu1 %v1189_v48  ;;  %p1293_p10 = scmp.ne.s32.totalorder %s926_s20, %s1292_s4  ;;  %p1298_p12 = scmp.lt.s32.totalorder %s1292_s4, %s1292_s4 }
  0x61   :  { %1066 = vmatpush3.bf16.msra.mxu0 %v1190_v49  ;;  %p1299_p13 = por %p1298_p12, %p1297_p11 }
  0x62   :  { %1088 = vmatpush3.bf16.msra.mxu1 %v1191_v50  ;;  %1067 = vmatprep.subr.bf16.mxu0 %v1192_v51 }
  0x63   :  { %1089 = vmatprep.subr.bf16.mxu1 %v1193_v52  ;;  %p1300_p0 = pnand %p1299_p13, %p1293_p10 }
  0x65   :  { %1068 = vmatpush3.bf16.msra.mxu0 %v1194_v53 }
  0x66   :  { %1090 = vmatpush3.bf16.msra.mxu1 %v1195_v54  ;;  %1069 = vmatprep.subr.bf16.mxu0 %v1196_v55  ;;  %v1008_v55 = vld [vmem:[%s1441_s6] ss:$0 sm:$0xff] }
  0x67   :  { %1091 = vmatprep.subr.bf16.mxu1 %v1197_v56 }
  0x69   :  { %1070 = vmatpush3.bf16.msra.mxu0 %v1198_v57 }
  0x6a   :  { %1092 = vmatpush3.bf16.msra.mxu1 %v1199_v58  ;;  %1071 = vmatprep.subr.bf16.mxu0 %v1200_v59 }
  0x6b   :  { %1093 = vmatprep.subr.bf16.mxu1 %v1201_v60 }
  0x6d   :  { %1072 = vmatpush3.bf16.msra.mxu0 %v1202_v61 }
  0x6e   :  { %1094 = vmatpush3.bf16.msra.mxu1 %v1203_v62  ;;  %1073 = vmatprep.subr.bf16.mxu0 %v1204_v63 }
  0x6f   :  { %1095 = vmatprep.subr.bf16.mxu1 %v1205_v0 }
  0x71   :  { %1074 = vmatpush3.bf16.msra.mxu0 %v1206_v1 }
  0x72   :  { %1096 = vmatpush3.bf16.msra.mxu1 %v1207_v2  ;;  %1075 = vmatprep.subr.bf16.mxu0 %v1208_v3 }
  0x73   :  { %1097 = vmatprep.subr.bf16.mxu1 %v1209_v4 }
  0x75   :  { %1076 = vmatpush3.bf16.msra.mxu0 %v1210_v5 }
  0x76   :  { %1098 = vmatpush3.bf16.msra.mxu1 %v1211_v6  ;;  %1114 = vmatprep.subr.bf16.mxu0 %v1326_v16 }
  0x78   :  { %730 = vmatmul.mubr.bf16.vlgmr.msra.gmra.mrb[4].mxu0 %v939_v8 }
  0x79   :  { %770 = vmatmul.mubr.bf16.vlgmr.msra.gmra.mrb[4].mxu1 %v941_v12  ;;  %1115 = vmatpush3.bf16.msra.mxu0 %v1216_v15 }
  0x7a   :  { %1116 = vmatprep.subr.bf16.mxu0 %v1326_v16  ;;  %1130 = vmatprep.mubr.msk.bf16.mxu0 %vm1327_vm0, %v1326_v16 }
  0x7d   :  { %1117 = vmatpush3.bf16.msra.mxu0 %v1217_v17 }
  0x7e   :  { %1118 = vmatprep.subr.bf16.mxu0 %v1326_v16 }
  0x81   :  { %1119 = vmatpush3.bf16.msra.mxu0 %v1218_v18 }
  0x82   :  { %1120 = vmatprep.subr.bf16.mxu0 %v1326_v16 }
  0x85   :  { %1121 = vmatpush3.bf16.msra.mxu0 %v1219_v19 }
  0x86   :  { %1122 = vmatprep.subr.bf16.mxu0 %v1326_v16 }
  0x89   :  { %1123 = vmatpush3.bf16.msra.mxu0 %v1220_v20 }
  0x8a   :  { %1124 = vmatprep.subr.bf16.mxu0 %v1326_v16 }
  0x8d   :  { %1125 = vmatpush3.bf16.msra.mxu0 %v1221_v21 }
  0x8e   :  { %1126 = vmatprep.subr.bf16.mxu0 %v1326_v16 }
  0x91   :  { %1127 = vmatpush3.bf16.msra.mxu0 %v1222_v22 }
  0x92   :  { %1128 = vmatprep.subr.bf16.mxu0 %v1326_v16 }
  0x95   :  { %1129 = vmatpush3.bf16.msra.mxu0 %v1223_v23 }
  0xca   :  { %v787_v35 = vpop.permute.xlu0 %786 }
  0xce   :  { %v795_v48 = vpop.permute.xlu0 %794 }
  0xcf   :  { %v803_v51 = vmul.f32 %v1007_v47, %v795_v48 }
 0x12b   :  { %v1033_v24 = vpop.f32.mrb[0].mxu0 }
 0x12c   :  { %v1055_v25 = vpop.f32.mrb[0].mxu1  ;;  %v1034_v26 = vpop.f32.mrb[1].mxu0 }
 0x12d   :  { %v1056_v27 = vpop.f32.mrb[1].mxu1  ;;  %v1035_v28 = vadd.f32 %v1034_v26, %v1033_v24  ;;  %v1036_v30 = vpop.f32.mrb[2].mxu0 }
 0x12e   :  { %v1057_v29 = vadd.f32 %v1056_v27, %v1055_v25  ;;  %v1058_v31 = vpop.f32.mrb[2].mxu1  ;;  %v1037_v32 = vpop.f32.mrb[3].mxu0 }
 0x12f   :  { %v1059_v33 = vpop.f32.mrb[3].mxu1 }
 0x130   :  { %v692_v34 = vadd.f32 %v1057_v29, %v1035_v28 }
 0x14b   :  { %v1077_v36 = vpop.f32.mrb[4].mxu0 }
 0x14c   :  { %v1099_v37 = vpop.f32.mrb[4].mxu1  ;;  %v1078_v38 = vpop.f32.mrb[5].mxu0 }
 0x14d   :  { %v1100_v39 = vpop.f32.mrb[5].mxu1  ;;  %v1079_v40 = vadd.f32 %v1078_v38, %v1077_v36  ;;  %v1080_v42 = vpop.f32.mrb[6].mxu0 }
 0x14e   :  { %v1101_v41 = vadd.f32 %v1100_v39, %v1099_v37  ;;  %v1102_v43 = vpop.f32.mrb[6].mxu1  ;;  %v1081_v44 = vpop.f32.mrb[7].mxu0 }
 0x14f   :  { %v1103_v45 = vpop.f32.mrb[7].mxu1  ;;  %v732_v46 = vadd.f32 %v1079_v40, %v692_v34 }
 0x151   :  { %v772_v49 = vadd.f32 %v1101_v41, %v732_v46 }
 0x153   :  { %v789_v50 = vmul.f32 %v787_v35, %v772_v49 }
 0x155   :  { %v804_v52 = vadd.f32 %v803_v51, %v789_v50 }
 0x157   :  { %1224 = vtanh.f32 %v804_v52 }
 0x161   :  { %v1225_v53 = vpop.eup %1224 }
 0x162   :  { %v806_v54 = vpack.c.bf16 %v1225_v53, %v1225_v53 }
 0x164   :  { %1131 = vmatmul.mubr.bf16.vlgmr.msra.gmra.mrb[8].mxu0 %v806_v54 }
 0x237   :  { %v912_v56 = vpop.f32.mrb[8].mxu0 }
 0x238   :  { %v913_v57 = vadd.f32 %v1008_v55, %v912_v56  ;;  %v1132_v58 = vpop.f32.mrb[9].mxu0 }
 0x239   :  { %v915_v59 = vpop.f32.mrb[10].mxu0 }
 0x23a   :  { %918 = vst [vmem:[#allocation9] sm:$0xff] %v913_v57  ;;  %v1133_v60 = vpop.f32.mrb[11].mxu0 }
 0x23b   :  { %1303 = shalt.err (!%p1300_p0)
}
 0x23c   :  { %s1304_s6 = scalar_lea.hbm %s1442_s7, 128 }
 0x23d   :  { %p1305_p1 = scmp.ne.s32.totalorder %s1442_s7, %s1304_s6  ;;  %p1308_p2 = scmp.lt.u32.totalorder %s1304_s6, %s1442_s7 }
 0x23f   :  { %p1310_p3 = pnand %p1308_p2, %p1305_p1 }
 0x241   :  { %1313 = shalt.err (!%p1310_p3)
}
 0x242   :  { %928 = dma.vmem_to_hbm [thread:$0]  %s926_s20, 128, %s1442_s7, [#allocation5]  }
 0x243   :  { %1318 = dma.done.wait [#allocation5], 128  }
 0x244   :  { %1319 = vsyncadd [#allocation5], 4294967168 }
 0x245   :  { %932 = vsyncpa [#allocation4], 1 }
 0x246   :  { %933 = vsyncpa [#allocation7], 1 }
 0x247   :  { %934 = vsyncpa [#allocation5], 1 }

</bundles_post_ra>
